<compile_context>
chip_gen: v7x
topology: tpu7x:2x2x1
jax: 0.10.0
libtpu: 0.0.40
codegen_flags: <defaults>
</compile_context>

<pallas_src>
import functools

import jax
import jax.numpy as jnp
import numpy as np
from jax.experimental import pallas as pl
from jax.experimental.pallas import tpu as pltpu


# ----------------------------- Pallas kernel ---------------------------------

def _pair_embed_kernel(mask_ref,            # SMEM (B, L) int32 (scalar prefetch)
                       xk_ref,              # (1, E, T)     key-atom embeddings
                       dist_ref,            # (1, 1, 1, T)  pair distances (f32)
                       kv_ref,              # (1, 1, T)     key-valid plane (f32)
                       hx_ref,              # (1, 1, H, 1)  x_i @ w1b for (i, b) (f32)
                       offset_ref,          # (G, 1)        RBF centers
                       wjg_ref,             # (H, E+G)      fused [w1a ; wrbf@w1c]^T
                       bin_ref,             # (H, 1)        fused input bias
                       w2_ref,              # (O, H)        output weights^T
                       b2_ref,              # (O, 1)        output bias
                       out_ref,             # (1, 1, O, T)
                       cat_ref,             # VMEM scratch (E+G, T), carried over i
                       *, coeff, e_dim, approx_gelu):
    b = pl.program_id(0)
    i = pl.program_id(2)

    # Key rows of the MLP input are identical for every query atom i: refresh the
    # persistent scratch only when the (b, t) tile changes (i wraps to 0).
    @pl.when(i == 0)
    def _():
        cat_ref[:e_dim, :] = xk_ref[0].astype(cat_ref.dtype)

    # Gaussian RBF expansion of this query atom's distances (exp -> EUP slot).
    d = dist_ref[0, 0]                                             # (1, T)
    gauss = jnp.exp(coeff * (d - offset_ref[...]) ** 2)            # (G, T)
    cat_ref[e_dim:, :] = gauss.astype(cat_ref.dtype)

    # Fused input layer (RBF linear algebraically folded into the weights) plus the
    # x_i contribution (host-precomputed, enters as a per-(i,b) bias column).
    h = jnp.dot(wjg_ref[...], cat_ref[...],
                preferred_element_type=jnp.float32)                # (H, T)
    h = h + hx_ref[0, 0] + bin_ref[...]
    h = jax.nn.gelu(h, approximate=approx_gelu)                    # tanh form -> EUP

    out = (jnp.dot(w2_ref[...], h.astype(w2_ref.dtype),
                   preferred_element_type=jnp.float32)
           + b2_ref[...])                                          # (O, T)

    # On-chip mask: key-valid lane plane * query-valid SMEM scalar (no (L,L,B) tensor).
    qv = mask_ref[b, i].astype(jnp.float32)
    valid = kv_ref[0] * qv                                         # (1, T)
    out_ref[0, 0] = jnp.where(valid > 0.0, out, -jnp.inf)


# ------------------------------ wrapper ---------------------------------------

def _round_up(v, m):
    return ((v + m - 1) // m) * m


def _full_spec(shape):
    zeros = (0,) * len(shape)
    return pl.BlockSpec(shape, lambda *_: zeros)


def pair_embed_forward(x, dist, mask, params, *,
                       num_heads, num_masks, rbf_radius, num_gaussians,
                       max_tile_cols=2048,
                       matmul_dtype=jnp.bfloat16,
                       approx_gelu=True):
    """x: (L, B, E) f32, dist: (L, L, B) f32, mask: (B, L) bool."""
    L, B, E = x.shape
    G = num_gaussians
    H = params["w1a"].shape[1]
    O = num_heads * num_masks

    # Key-atom (lane) axis: pad to full 128-lane tiles, tile within a VMEM budget.
    # TODO(synk): make max_tile_cols generation-aware (v7x has only 64 MiB VMEM).
    T = min(_round_up(L, 128), _round_up(max_tile_cols, 128))
    Lp = _round_up(L, T)
    n_t = Lp // T
    pad = Lp - L

    x32 = x.astype(jnp.float32)

    # ---- host-side algebraic fusion of the RBF linear into the input layer ----
    wrbf_w1c = params["wrbf"] @ params["w1c"]                                  # (G, H)
    wjgT = jnp.concatenate([params["w1a"], wrbf_w1c], axis=0).T.astype(matmul_dtype)  # (H, E+G)
    binT = (params["b1"] + params["brbf"] @ params["w1c"]).T                   # (H, 1)
    w2T = params["w2"].T.astype(matmul_dtype)                                  # (O, H)
    b2T = params["b2"].T                                                       # (O, 1)
    offset_col = params["offset"].T.astype(jnp.float32)                        # (G, 1)

    # x_i contribution precomputed on the host: only L*B*H numbers (tiny).
    hx = jnp.einsum("lbe,eh->lbh", x32, params["w1b"])[..., None]              # (L, B, H, 1)

    # ---- feature-major / key-last views of the streamed inputs ----------------
    xkT = jnp.transpose(x32, (1, 2, 0)).astype(matmul_dtype)                   # (B, E, L)
    xkT = jnp.pad(xkT, ((0, 0), (0, 0), (0, pad)))                             # (B, E, Lp)
    dist_t = jnp.transpose(dist.astype(jnp.float32), (2, 0, 1))                # (B, L, L)
    dist4 = jnp.pad(dist_t, ((0, 0), (0, 0), (0, pad)))[:, :, None, :]         # (B, L, 1, Lp)
    kv = jnp.pad(mask.astype(jnp.float32), ((0, 0), (0, pad)))[:, None, :]     # (B, 1, Lp)
    mask_i32 = mask.astype(jnp.int32)                                          # (B, L) -> SMEM

    step = rbf_radius / (num_gaussians - 1)
    coeff = float(-0.5 / (step * step))

    cost = pl.CostEstimate(
        flops=2 * L * Lp * B * H * (E + G + O),
        transcendentals=L * Lp * B * (G + H),
        bytes_accessed=(x.size + dist.size + hx.size) * 4 + L * B * O * Lp * 4)

    kernel = functools.partial(_pair_embed_kernel, coeff=coeff, e_dim=E,
                               approx_gelu=approx_gelu)

    out = pl.pallas_call(
        kernel,
        out_shape=jax.ShapeDtypeStruct((L, B, O, Lp), jnp.float32),
        grid_spec=pltpu.PrefetchScalarGridSpec(
            num_scalar_prefetch=1,
            grid=(B, n_t, L),
            in_specs=[
                pl.BlockSpec((1, E, T), lambda b, t, i, m: (b, 0, t)),        # keys (1x/(b,t))
                pl.BlockSpec((1, 1, 1, T), lambda b, t, i, m: (b, i, 0, t)),  # distances
                pl.BlockSpec((1, 1, T), lambda b, t, i, m: (b, 0, t)),        # key valid
                pl.BlockSpec((1, 1, H, 1), lambda b, t, i, m: (i, b, 0, 0)),  # hx (x_i term)
                _full_spec((G, 1)),                                           # RBF centers
                _full_spec((H, E + G)),                                       # fused input W
                _full_spec((H, 1)),                                           # fused input bias
                _full_spec((O, H)),                                           # output W
                _full_spec((O, 1)),                                           # output bias
            ],
            out_specs=pl.BlockSpec((1, 1, O, T), lambda b, t, i, m: (i, b, 0, t)),
            scratch_shapes=[pltpu.VMEM((E + G, T), matmul_dtype)],
        ),
        compiler_params=pltpu.CompilerParams(
            dimension_semantics=("parallel", "parallel", "arbitrary")),
        cost_estimate=cost,
    )(mask_i32, xkT, dist4, kv, hx, offset_col, wjgT, binT, w2T, b2T)

    # ---- glue: drop key padding, permute to (num_masks, B*num_heads, L, L) ----
    out = out[:, :, :, :L]                                 # kernel layout: [i, b, h*nm+m, j]
    out = out.reshape(L, B, num_heads, num_masks, L)
    out = out.transpose(3, 1, 2, 0, 4)                     # (nm, B, nh, L, L)
    return out.reshape(num_masks, B * num_heads, L, L)


# ------------------------- plain-JAX reference --------------------------------

def pair_embed_reference(x, dist, mask, params, *, num_heads, num_masks,
                         rbf_radius, num_gaussians, approx_gelu=False):
    L, B, E = x.shape
    step = rbf_radius / (num_gaussians - 1)
    coeff = -0.5 / (step * step)
    gauss = jnp.exp(coeff * (dist[..., None] - params["offset"][0]) ** 2)
    pairs = gauss @ params["wrbf"] + params["brbf"][0]
    xj = jnp.broadcast_to(x[None, :, :, :], (L, L, B, E))
    xi = jnp.broadcast_to(x[:, None, :, :], (L, L, B, E))
    inputs = jnp.concatenate([xj, xi, pairs], axis=-1)
    w1 = jnp.concatenate([params["w1a"], params["w1b"], params["w1c"]], axis=0)
    h = jax.nn.gelu(inputs @ w1 + params["b1"][0], approximate=approx_gelu)
    out = h @ params["w2"] + params["b2"][0]
    entries = mask.T[None, :, :] & mask.T[:, None, :]
    out = jnp.where(entries[..., None], out, -jnp.inf)
    out = out.reshape(L, L, B, num_heads, num_masks).transpose(4, 2, 3, 0, 1)
    return out.reshape(num_masks, B * num_heads, L, L)


# --------------------------------- main ----------------------------------------

if __name__ == "__main__":
    L, B = 16, 2
    embed_dim, hidden_dim = 32, 32
    num_heads, num_masks = 4, 1
    num_gaussians = 16
    rbf_radius = 12.0

    key = jax.random.PRNGKey(0)
    kx, kd, km, k1, k2, k3, k4, k5, k6 = jax.random.split(key, 9)

    x = jax.random.normal(kx, (L, B, embed_dim), dtype=jnp.float32)
    dist = jax.random.uniform(kd, (L, L, B), dtype=jnp.float32,
                              minval=0.0, maxval=rbf_radius)
    mask = jax.random.uniform(km, (B, L)) > 0.2                   # (B, L) bool

    O = num_heads * num_masks
    s_rbf = 1.0 / np.sqrt(num_gaussians)
    s_in = 1.0 / np.sqrt(3 * embed_dim)
    s_out = 1.0 / np.sqrt(hidden_dim)
    params = {
        "offset": jnp.linspace(0.0, rbf_radius, num_gaussians,
                               dtype=jnp.float32).reshape(1, num_gaussians),
        "wrbf": s_rbf * jax.random.normal(k1, (num_gaussians, embed_dim), jnp.float32),
        "brbf": 0.01 * jnp.ones((1, embed_dim), jnp.float32),
        "w1a": s_in * jax.random.normal(k2, (embed_dim, hidden_dim), jnp.float32),
        "w1b": s_in * jax.random.normal(k3, (embed_dim, hidden_dim), jnp.float32),
        "w1c": s_in * jax.random.normal(k4, (embed_dim, hidden_dim), jnp.float32),
        "b1": 0.01 * jnp.ones((1, hidden_dim), jnp.float32),
        "w2": s_out * jax.random.normal(k5, (hidden_dim, O), jnp.float32),
        "b2": 0.01 * jax.random.normal(k6, (1, O), jnp.float32),
    }

    kwargs = dict(num_heads=num_heads, num_masks=num_masks,
                  rbf_radius=rbf_radius, num_gaussians=num_gaussians)

    # Fast path (default): bf16 MXU operands + tanh GELU.
    out_fast = jax.block_until_ready(
        pair_embed_forward(x, dist, mask, params, **kwargs))

    # Bit-faithful path: f32 matmuls + exact erf GELU (PyTorch semantics).
    out_exact = jax.block_until_ready(
        pair_embed_forward(x, dist, mask, params,
                           matmul_dtype=jnp.float32, approx_gelu=False, **kwargs))

    ref = jax.block_until_ready(
        pair_embed_reference(x, dist, mask, params, **kwargs))   # exact GELU, f32

    assert out_fast.shape == (num_masks, B * num_heads, L, L), out_fast.shape

    # Mechanics check (layout, fusion, masking): exact-mode kernel vs exact reference.
    np.testing.assert_allclose(np.asarray(out_exact), np.asarray(ref),
                               rtol=1e-4, atol=1e-4)
    # Fast path: bf16 operands + tanh-GELU deviate slightly from the exact reference.
    np.testing.assert_allclose(np.asarray(out_fast), np.asarray(ref),
                               rtol=5e-2, atol=5e-2)
    print("KERNEL_OK")
</pallas_src>

<mosaic_0001>
module attributes {stable_mosaic.version = 11 : i64} {
  func.func @_pair_embed_kernel(%arg0: i32, %arg1: i32, %arg2: i32, %arg3: memref<2x16xi32, #tpu.memory_space<smem>>, %arg4: memref<1x32x128xbf16, #tpu.memory_space<vmem>>, %arg5: memref<1x1x1x128xf32, #tpu.memory_space<vmem>>, %arg6: memref<1x1x128xf32, #tpu.memory_space<vmem>>, %arg7: memref<1x1x32x1xf32, #tpu.memory_space<vmem>>, %arg8: memref<16x1xf32, #tpu.memory_space<vmem>>, %arg9: memref<32x48xbf16, #tpu.memory_space<vmem>>, %arg10: memref<32x1xf32, #tpu.memory_space<vmem>>, %arg11: memref<4x32xbf16, #tpu.memory_space<vmem>>, %arg12: memref<4x1xf32, #tpu.memory_space<vmem>>, %arg13: memref<1x1x4x128xf32, #tpu.memory_space<vmem>>, %arg14: memref<48x128xbf16, #tpu.memory_space<vmem>>) attributes {dimension_semantics = [#tpu.dimension_semantics<parallel>, #tpu.dimension_semantics<parallel>, #tpu.dimension_semantics<arbitrary>], iteration_bounds = array<i64: 2, 1, 16>, scalar_prefetch = 1 : i64, scratch_operands = 1 : i64, tpu.core_type = #tpu.core_type<tc>, window_params = [{transform_indices = @transform_0, window_bounds = array<i64: 1, 32, 128>}, {transform_indices = @transform_1, window_bounds = array<i64: 1, 1, 1, 128>}, {transform_indices = @transform_2, window_bounds = array<i64: 1, 1, 128>}, {transform_indices = @transform_3, window_bounds = array<i64: 1, 1, 32, 1>}, {pipeline_mode = #tpu.pipeline_mode<synchronous>, transform_indices = @transform_4, window_bounds = array<i64: 16, 1>}, {pipeline_mode = #tpu.pipeline_mode<synchronous>, transform_indices = @transform_5, window_bounds = array<i64: 32, 48>}, {pipeline_mode = #tpu.pipeline_mode<synchronous>, transform_indices = @transform_6, window_bounds = array<i64: 32, 1>}, {pipeline_mode = #tpu.pipeline_mode<synchronous>, transform_indices = @transform_7, window_bounds = array<i64: 4, 32>}, {pipeline_mode = #tpu.pipeline_mode<synchronous>, transform_indices = @transform_8, window_bounds = array<i64: 4, 1>}, {transform_indices = @transform_9, window_bounds = array<i64: 1, 1, 4, 128>}]} {
    %c0_i32 = arith.constant 0 : i32
    %0 = arith.cmpi eq, %arg2, %c0_i32 : i32
    %1 = arith.extui %0 : i1 to i32
    %c0_i32_0 = arith.constant 0 : i32
    %2 = arith.cmpi ne, %1, %c0_i32_0 : i32
    scf.if %2 {
      %c0_36 = arith.constant 0 : index
      %c0_37 = arith.constant 0 : index
      %c0_38 = arith.constant 0 : index
      %61 = vector.load %arg4[%c0_36, %c0_37, %c0_38] : memref<1x32x128xbf16, #tpu.memory_space<vmem>>, vector<1x32x128xbf16>
      %62 = vector.shape_cast %61 : vector<1x32x128xbf16> to vector<32x128xbf16>
      %c0_39 = arith.constant 0 : index
      %c0_40 = arith.constant 0 : index
      %63 = vector.load %arg14[%c0_39, %c0_40] : memref<48x128xbf16, #tpu.memory_space<vmem>>, vector<32x128xbf16>
      tpu.vector_store %arg14[%c0_39, %c0_40], %62 {strides = array<i32>} : memref<48x128xbf16, #tpu.memory_space<vmem>>, vector<32x128xbf16>,
    } else {
    }
    %c0 = arith.constant 0 : index
    %c0_1 = arith.constant 0 : index
    %c0_2 = arith.constant 0 : index
    %c0_3 = arith.constant 0 : index
    %3 = vector.load %arg5[%c0, %c0_1, %c0_2, %c0_3] : memref<1x1x1x128xf32, #tpu.memory_space<vmem>>, vector<1x1x1x128xf32>
    %4 = vector.shape_cast %3 : vector<1x1x1x128xf32> to vector<1x128xf32>
    %c0_4 = arith.constant 0 : index
    %c0_5 = arith.constant 0 : index
    %5 = vector.load %arg8[%c0_4, %c0_5] : memref<16x1xf32, #tpu.memory_space<vmem>>, vector<16x1xf32>
    %6 = vector.broadcast %4 : vector<1x128xf32> to vector<16x128xf32>
    %7 = vector.broadcast %5 : vector<16x1xf32> to vector<16x128xf32>
    %8 = arith.subf %6, %7 : vector<16x128xf32>
    %9 = arith.mulf %8, %8 : vector<16x128xf32>
    %cst = arith.constant -7.812500e-01 : f32
    %10 = vector.broadcast %cst : f32 to vector<16x128xf32>
    %11 = arith.mulf %10, %9 : vector<16x128xf32>
    %12 = math.exp %11 : vector<16x128xf32>
    %13 = arith.truncf %12 : vector<16x128xf32> to vector<16x128xbf16>
    %c32 = arith.constant 32 : index
    %c0_6 = arith.constant 0 : index
    %14 = vector.load %arg14[%c32, %c0_6] : memref<48x128xbf16, #tpu.memory_space<vmem>>, vector<16x128xbf16>
    tpu.vector_store %arg14[%c32, %c0_6], %13 {strides = array<i32>} : memref<48x128xbf16, #tpu.memory_space<vmem>>, vector<16x128xbf16>,
    %c0_7 = arith.constant 0 : index
    %c0_8 = arith.constant 0 : index
    %15 = vector.load %arg9[%c0_7, %c0_8] : memref<32x48xbf16, #tpu.memory_space<vmem>>, vector<32x48xbf16>
    %c0_9 = arith.constant 0 : index
    %c0_10 = arith.constant 0 : index
    %16 = vector.load %arg14[%c0_9, %c0_10] : memref<48x128xbf16, #tpu.memory_space<vmem>>, vector<48x128xbf16>
    %cst_11 = arith.constant dense<0.000000e+00> : vector<32x128xf32>
    %17 = tpu.matmul %15, %16, %cst_11 {dimension_numbers = #tpu.dot_dimension_numbers<[1], [0], [0], [1], [0, 0, 1, 1], [], []>} : vector<32x48xbf16>, vector<48x128xbf16>, vector<32x128xf32> -> vector<32x128xf32>
    %c0_12 = arith.constant 0 : index
    %c0_13 = arith.constant 0 : index
    %c0_14 = arith.constant 0 : index
    %c0_15 = arith.constant 0 : index
    %18 = vector.load %arg7[%c0_12, %c0_13, %c0_14, %c0_15] : memref<1x1x32x1xf32, #tpu.memory_space<vmem>>, vector<1x1x32x1xf32>
    %19 = vector.shape_cast %18 : vector<1x1x32x1xf32> to vector<32x1xf32>
    %20 = vector.broadcast %19 : vector<32x1xf32> to vector<32x128xf32>
    %21 = arith.addf %17, %20 : vector<32x128xf32>
    %c0_16 = arith.constant 0 : index
    %c0_17 = arith.constant 0 : index
    %22 = vector.load %arg10[%c0_16, %c0_17] : memref<32x1xf32, #tpu.memory_space<vmem>>, vector<32x1xf32>
    %23 = vector.broadcast %22 : vector<32x1xf32> to vector<32x128xf32>
    %24 = arith.addf %21, %23 : vector<32x128xf32>
    %25 = arith.mulf %24, %24 : vector<32x128xf32>
    %26 = arith.mulf %24, %25 : vector<32x128xf32>
    %cst_18 = arith.constant 4.471500e-02 : f32
    %27 = vector.broadcast %cst_18 : f32 to vector<32x128xf32>
    %28 = arith.mulf %27, %26 : vector<32x128xf32>
    %29 = arith.addf %24, %28 : vector<32x128xf32>
    %cst_19 = arith.constant 0.797884583 : f32
    %30 = vector.broadcast %cst_19 : f32 to vector<32x128xf32>
    %31 = arith.mulf %30, %29 : vector<32x128xf32>
    %32 = math.tanh %31 : vector<32x128xf32>
    %cst_20 = arith.constant 1.000000e+00 : f32
    %33 = vector.broadcast %cst_20 : f32 to vector<32x128xf32>
    %34 = arith.addf %33, %32 : vector<32x128xf32>
    %cst_21 = arith.constant 5.000000e-01 : f32
    %35 = vector.broadcast %cst_21 : f32 to vector<32x128xf32>
    %36 = arith.mulf %35, %34 : vector<32x128xf32>
    %37 = arith.mulf %24, %36 : vector<32x128xf32>
    %c0_22 = arith.constant 0 : index
    %c0_23 = arith.constant 0 : index
    %38 = vector.load %arg11[%c0_22, %c0_23] : memref<4x32xbf16, #tpu.memory_space<vmem>>, vector<4x32xbf16>
    %39 = arith.truncf %37 : vector<32x128xf32> to vector<32x128xbf16>
    %cst_24 = arith.constant dense<0.000000e+00> : vector<4x128xf32>
    %40 = tpu.matmul %38, %39, %cst_24 {dimension_numbers = #tpu.dot_dimension_numbers<[1], [0], [0], [1], [0, 0, 1, 1], [], []>} : vector<4x32xbf16>, vector<32x128xbf16>, vector<4x128xf32> -> vector<4x128xf32>
    %c0_25 = arith.constant 0 : index
    %c0_26 = arith.constant 0 : index
    %41 = vector.load %arg12[%c0_25, %c0_26] : memref<4x1xf32, #tpu.memory_space<vmem>>, vector<4x1xf32>
    %42 = vector.broadcast %41 : vector<4x1xf32> to vector<4x128xf32>
    %43 = arith.addf %40, %42 : vector<4x128xf32>
    %44 = arith.index_cast %arg0 : i32 to index
    %45 = arith.index_cast %arg2 : i32 to index
    %46 = memref.load %arg3[%44, %45] : memref<2x16xi32, #tpu.memory_space<smem>>
    %47 = arith.sitofp %46 : i32 to f32
    %c0_27 = arith.constant 0 : index
    %c0_28 = arith.constant 0 : index
    %c0_29 = arith.constant 0 : index
    %48 = vector.load %arg6[%c0_27, %c0_28, %c0_29] : memref<1x1x128xf32, #tpu.memory_space<vmem>>, vector<1x1x128xf32>
    %49 = vector.shape_cast %48 : vector<1x1x128xf32> to vector<1x128xf32>
    %50 = vector.broadcast %47 : f32 to vector<1x128xf32>
    %51 = arith.mulf %49, %50 : vector<1x128xf32>
    %cst_30 = arith.constant 0.000000e+00 : f32
    %52 = vector.broadcast %cst_30 : f32 to vector<1x128xf32>
    %53 = arith.cmpf ogt, %51, %52 : vector<1x128xf32>
    %cst_31 = arith.constant 0xFF800000 : f32
    %54 = vector.shape_cast %53 : vector<1x128xi1> to vector<1x128xi1>
    %55 = vector.broadcast %54 : vector<1x128xi1> to vector<4x128xi1>
    %56 = vector.broadcast %cst_31 : f32 to vector<4x128xf32>
    %57 = arith.select %55, %43, %56 : vector<4x128xi1>, vector<4x128xf32>
    %c0_32 = arith.constant 0 : index
    %c0_33 = arith.constant 0 : index
    %c0_34 = arith.constant 0 : index
    %c0_35 = arith.constant 0 : index
    %58 = vector.load %arg13[%c0_32, %c0_33, %c0_34, %c0_35] : memref<1x1x4x128xf32, #tpu.memory_space<vmem>>, vector<1x1x4x128xf32>
    %59 = vector.shape_cast %58 : vector<1x1x4x128xf32> to vector<4x128xf32>
    %60 = vector.shape_cast %57 : vector<4x128xf32> to vector<1x1x4x128xf32>
    tpu.vector_store %arg13[%c0_32, %c0_33, %c0_34, %c0_35], %60 {strides = array<i32>} : memref<1x1x4x128xf32, #tpu.memory_space<vmem>>, vector<1x1x4x128xf32>,
    return
  }
  func.func @transform_0(%arg0: i32, %arg1: i32, %arg2: i32, %arg3: memref<2x16xi32, #tpu.memory_space<smem>>) -> (i32, i32, i32) {
    %c0_i32 = arith.constant 0 : i32
    %c0_i32_0 = arith.constant 0 : i32
    return %arg0, %c0_i32, %arg1 : i32, i32, i32
  }
  func.func @transform_1(%arg0: i32, %arg1: i32, %arg2: i32, %arg3: memref<2x16xi32, #tpu.memory_space<smem>>) -> (i32, i32, i32, i32) {
    %c0_i32 = arith.constant 0 : i32
    %c0_i32_0 = arith.constant 0 : i32
    return %arg0, %arg2, %c0_i32, %arg1 : i32, i32, i32, i32
  }
  func.func @transform_2(%arg0: i32, %arg1: i32, %arg2: i32, %arg3: memref<2x16xi32, #tpu.memory_space<smem>>) -> (i32, i32, i32) {
    %c0_i32 = arith.constant 0 : i32
    %c0_i32_0 = arith.constant 0 : i32
    return %arg0, %c0_i32, %arg1 : i32, i32, i32
  }
  func.func @transform_3(%arg0: i32, %arg1: i32, %arg2: i32, %arg3: memref<2x16xi32, #tpu.memory_space<smem>>) -> (i32, i32, i32, i32) {
    %c0_i32 = arith.constant 0 : i32
    %c0_i32_0 = arith.constant 0 : i32
    %c0_i32_1 = arith.constant 0 : i32
    return %arg2, %arg0, %c0_i32, %c0_i32_0 : i32, i32, i32, i32
  }
  func.func @transform_4(%arg0: i32, %arg1: i32, %arg2: i32, %arg3: memref<2x16xi32, #tpu.memory_space<smem>>) -> (i32, i32) {
    %c0_i32 = arith.constant 0 : i32
    %c0_i32_0 = arith.constant 0 : i32
    %c0_i32_1 = arith.constant 0 : i32
    return %c0_i32, %c0_i32_0 : i32, i32
  }
  func.func @transform_5(%arg0: i32, %arg1: i32, %arg2: i32, %arg3: memref<2x16xi32, #tpu.memory_space<smem>>) -> (i32, i32) {
    %c0_i32 = arith.constant 0 : i32
    %c0_i32_0 = arith.constant 0 : i32
    %c0_i32_1 = arith.constant 0 : i32
    return %c0_i32, %c0_i32_0 : i32, i32
  }
  func.func @transform_6(%arg0: i32, %arg1: i32, %arg2: i32, %arg3: memref<2x16xi32, #tpu.memory_space<smem>>) -> (i32, i32) {
    %c0_i32 = arith.constant 0 : i32
    %c0_i32_0 = arith.constant 0 : i32
    %c0_i32_1 = arith.constant 0 : i32
    return %c0_i32, %c0_i32_0 : i32, i32
  }
  func.func @transform_7(%arg0: i32, %arg1: i32, %arg2: i32, %arg3: memref<2x16xi32, #tpu.memory_space<smem>>) -> (i32, i32) {
    %c0_i32 = arith.constant 0 : i32
    %c0_i32_0 = arith.constant 0 : i32
    %c0_i32_1 = arith.constant 0 : i32
    return %c0_i32, %c0_i32_0 : i32, i32
  }
  func.func @transform_8(%arg0: i32, %arg1: i32, %arg2: i32, %arg3: memref<2x16xi32, #tpu.memory_space<smem>>) -> (i32, i32) {
    %c0_i32 = arith.constant 0 : i32
    %c0_i32_0 = arith.constant 0 : i32
    %c0_i32_1 = arith.constant 0 : i32
    return %c0_i32, %c0_i32_0 : i32, i32
  }
  func.func @transform_9(%arg0: i32, %arg1: i32, %arg2: i32, %arg3: memref<2x16xi32, #tpu.memory_space<smem>>) -> (i32, i32, i32, i32) {
    %c0_i32 = arith.constant 0 : i32
    %c0_i32_0 = arith.constant 0 : i32
    return %arg2, %arg0, %c0_i32, %arg1 : i32, i32, i32, i32
  }
}

</mosaic_0001>

<bundles_post_ra>
// kernel: tpu_custom_call.1
= control target key start
LH: loop header
LB: loop body
LE: loop exit
PB: predicated region body
PF: predicated region fallthrough
CT: control target
= control target key end

     0   :  { %s1452_s0 = inlined_call_operand.vmem [shape: s32[2,16], index: 0, kind: input, shape index: {}]   ;;  %s1453_s1 = inlined_call_operand.vmem [shape: bf16[2,32,128], index: 1, kind: input, shape index: {}]   ;;  %s1454_s2 = inlined_call_operand.vmem [shape: f32[2,16,1,128], index: 2, kind: input, shape index: {}]   ;;  %s1455_s3 = inlined_call_operand.vmem [shape: f32[2,1,128], index: 3, kind: input, shape index: {}]   ;;  %s1456_s4 = inlined_call_operand.vmem [shape: f32[16,2,32,1], index: 4, kind: input, shape index: {}]   ;;  %s1457_s5 = inlined_call_operand.vmem [shape: f32[16,1], index: 5, kind: input, shape index: {}]   ;;  %s1458_s6 = inlined_call_operand.vmem [shape: bf16[32,48], index: 6, kind: input, shape index: {}]   ;;  %s1459_s7 = inlined_call_operand.vmem [shape: f32[32,1], index: 7, kind: input, shape index: {}]   ;;  %s1460_s8 = inlined_call_operand.vmem [shape: bf16[4,32], index: 8, kind: input, shape index: {}]   ;;  %s1461_s9 = inlined_call_operand.vmem [shape: f32[4,1], index: 9, kind: input, shape index: {}]   ;;  %s1462_s10 = inlined_call_operand.hbm [shape: f32[16,2,4,128], index: 10, kind: output, shape index: {}]  }
   0x1   :  { %1477 = sst [smem:[#allocation20_spill]] %s1462_s10  ;;  %s15_s15 = sshll.u32 %s1452_s0, 4  ;;  %s16_s15 = int_to_ptr.vmem [resolvable:$true] %s15_s15 }
   0x2   :  { %s1056_s16 = scalar_lea.vmem %s16_s15, 32  ;;  %p1061_p1 = scmp.lt.s32.totalorder %s16_s15, %s16_s15 }
   0x3   :  { %p1057_p0 = scmp.ne.s32.totalorder %s16_s15, %s1056_s16  ;;  %p1062_p2 = scmp.lt.s32.totalorder %s1056_s16, %s1056_s16 }
   0x5   :  { %p1063_p3 = por %p1062_p2, %p1061_p1 }
   0x7   :  { %p1064_p4 = pnand %p1063_p3, %p1057_p0 }
   0x9   :  { %1067 = shalt.err (!%p1064_p4)  }
   0xa   :  { %s1166_s17 = smov [#allocation4]  }
   0xb   :  { %18 = dma.vmem_to_smem %s16_s15, 32, %s1166_s17, [#allocation3] }
   0xc   :  { %1128 = dma.done.wait [#allocation3], 32 }
   0xd   :  { %1129 = vsyncadd [#allocation3], 4294967264 }
   0xe   :  { %20 = sfence }
   0xf   :  { %21 = vsyncpa [#allocation6], 0 }
  0x10   :  { %23 = vsyncpa [#allocation6 + $0x1], 0  ;;  %s1229_s18 = smov 0   ;;  %s1231_s19 = smov 0  }
  0x11   :  { %s1233_s0 = smov 0   ;;  %s1235_s20 = smov 0  }
  0x12   :  { %s1237_s21 = smov 0   ;;  %s1239_s22 = smov 0  }
  0x13   :  { %s1241_s23 = smov 0   ;;  %s1243_s24 = smov 0  }
  0x14 LB: > { %1478 = sst [smem:[#allocation9_spill]] %s1136_s18  ;;  %s909_s25 = sadd.s32 4294967295, %s1164_s24   ;;  %s1164_s24 = sphi %s1243_s24, %s29_s24   ;;  %s1160_s23 = sphi %s1241_s23, %s1505_s23   ;;  %s1156_s22 = sphi %s1239_s22, %s1504_s22   ;;  %s1152_s21 = sphi %s1237_s21, %s1503_s21   ;;  %s1148_s20 = sphi %s1235_s20, %s1502_s20   ;;  %s1144_s0 = sphi %s1233_s0, %s1501_s0   ;;  %s1140_s19 = sphi %s1231_s19, %s1500_s19   ;;  %s1136_s18 = sphi %s1229_s18, %s1499_s18  }
  0x15   : > { %1479 = sst [smem:[#allocation10_spill]] %s1140_s19  ;;  %s910_s26 = sadd.s32 4294967294, %s1164_s24  }
  0x16   : > { %1480 = sst [smem:[#allocation11_spill]] %s1144_s0  ;;  %s41_s27 = sadd.s32 1, %s1156_s22 }
  0x17   : > { %1481 = sst [smem:[#allocation12_spill]] %s1156_s22  ;;  %p42_p5 = scmp.ge.s32.totalorder %s41_s27, 16 }
  0x18   : > { %1482 = sst [smem:[#allocation13_spill]] %s1160_s23  ;;  %s48_s28 = sadd.s32 1, %s1160_s23 }
  0x19   : > { %1483 = sst [smem:[#allocation14_spill]] %s1164_s24  ;;  %p288_p6 = scmp.ne.s32.totalorder %s1144_s0, %s1140_s19 }
  0x1a   : > { %p289_p7 = scmp.eq.s32.totalorder %s909_s25, 31  ;;  %s1507_s27 = smov (%p42_p5, %s41_s27), 0 }
  0x1b   : > { %1484 = sst [smem:[#allocation15_spill]] %s1507_s27  ;;  %s1509_s28 = smov (!%p42_p5, %s48_s28), %s1160_s23 }
  0x1c   : > { %s271_s29 = ssub.s32 %s1156_s22, %s1507_s27  ;;  %p1280_p8 = por %p289_p7, %p288_p6 }
  0x1d   : > { %p50_p9 = scmp.ge.s32.totalorder %s1509_s28, 2  ;;  %p294_p10 = scmp.ne.s32.totalorder %s1140_s19, %s1136_s18 }
  0x1e   : > { %s1485_s30 = scalar_select %p1280_p8, 1, 0 }
  0x1f   : > { %p295_p11 = scmp.eq.s32.totalorder %s910_s26, 31  ;;  %p913_p12 = scmp.ge.s32.totalorder %s1164_s24, 1 }
  0x20   : > { %1486 = sst [smem:[#allocation16_spill]] %s1485_s30  ;;  %s1511_s28 = smov (%p50_p9, %s1509_s28), 0 }
  0x21   : > { %1487 = sst [smem:[#allocation17_spill]] %s1511_s28  ;;  %p1289_p13 = por %p295_p11, %p294_p10 }
  0x22   : > { %p373_p0 = scmp.lt.s32.totalorder %s1164_s24, 33  ;;  %s272_s12 = ssub.s32 %s1160_s23, %s1511_s28 }
  0x23   : > { %s1488_s11 = scalar_select %p1289_p13, 1, 0 }
  0x24   : > { %s278_s13 = sadd.s32 1, %s1144_s0  ;;  %s273_s14 = sor.u32 %s272_s12, %s271_s29 }
  0x25   : > { %1489 = sst [smem:[#allocation18_spill]] %s1488_s11  ;;  %p374_p1 = pnand %p913_p12, %p373_p0 }
  0x26   : > { %p276_p2 = scmp.eq.s32.totalorder %s273_s14, 0  ;;  %s1467_s16 = sand.u32 (!%p374_p1), 1, %s1140_s19  }
  0x27   : > { %377 = sbr.rel (%p374_p1) target bundleno = 701 (0x2bd), region = 56  ;;  %p437_p3 = scmp.lt.s32.totalorder (!%p374_p1), %s1152_s21, 1 }
  0x28   : > { %s1298_s15 = scalar_select %p276_p2, %s1144_s0, %s278_s13  }
  0x29   : > { %s1304_s17 = sshll.u32 (!%p374_p1), %s1467_s16, 2  ;;  %p447_p4 = scmp.lt.s32.totalorder (!%p374_p1), %s1148_s20, 15 }
  0x2a   : > { %1490 = sst [smem:[#allocation19_spill]] %s1298_s15  ;;  %s436_s13 = scalar_lea.vmem (!%p374_p1), [#allocation5], %s1304_s17 }
  0x2b   : > { %p921_p5 = scmp.ne.s32.totalorder (!%p374_p1), %s1148_s20, 0 }
  0x2e   : > { %s1308_s25 = scalar_select %p437_p3, %s1152_s21, 1 }
  0x2f   : > { %s448_s26 = scalar_select %p447_p4, %s1148_s20, 15 }
  0x30   : > { %s936_s29 = sshll.u32 %s1308_s25, 4  ;;  %s460_s14 = scalar_lea.vmem %s1455_s3, %s1308_s25 }
  0x31   : > { %s444_s23 = scalar_lea.vmem %s1453_s1, %s936_s29  ;;  %s1319_s22 = sadd.s32 %s936_s29, %s448_s26 }
  0x32   : > { %s454_s0 = scalar_lea.vmem %s1454_s2, %s1319_s22  ;;  %s918_s11 = sshll.u32 %s1308_s25, 2  ;;  %v1038_v0 = vld [vmem:[%s444_s23] sm:$0xff] (!%p921_p5)   ;;  %v1039_v1 = vld [vmem:[%s444_s23 + $0x8] sm:$0xff] (!%p921_p5)  }
  0x33   : > { %s919_s18 = sshll.u32 %s448_s26, 3  ;;  %474 = sbr.rel (%p921_p5) target bundleno = 58 (0x3a), region = 60  ;;  %491 = vst [vmem:[#allocation2] sm:$0xff] (!%p921_p5), %v1038_v0  ;;  %492 = vst [vmem:[#allocation2 + $0x8] sm:$0xff] (!%p921_p5), %v1039_v1 }
  0x34   : > { %s467_s24 = sadd.s32 %s919_s18, %s918_s11 }
  0x35   : > { %s920_s10 = sshll.u32 %s467_s24, 3 }
  0x36   : > { %s1329_s12 = scalar_lea.vmem %s1456_s4, %s920_s10 }
  0x3a PF: > { %v494_v2 = vld [vmem:[%s1457_s5] sm:$0xff]  ;;  %v1167_v3 = vmov 0   ;;  %v495_v4 = vld [vmem:[%s1457_s5 + $0x8] sm:$0xff]  ;;  %v533_v6 = vld [vmem:[%s1329_s12 + $0x10] sm:$0xff]  ;;  %vm565_vm0 = vcmask 392192   ;;  %v1168_v32 = vmov 0.0  }
  0x3b   : > { %1040 = vset.pattern.permute.xlu0 %v1167_v3  ;;  %1041 = vset.pattern.permute.xlu1 %v1167_v3  ;;  %v621_v5 = vld [vmem:[%s1459_s7] sm:$0xff]  ;;  %v623_v7 = vld [vmem:[%s1459_s7 + $0x10] sm:$0xff]  ;;  %v529_v10 = vld [vmem:[#allocation2 + $0x8] sm:$0xff]  ;;  %vm1169_vm1 = vmmov 0   ;;  %vm694_vm2 = vcmask 261120   ;;  %s738_s24 = sshra.s32 %s1148_s20, 7 }
  0x3c   : > { %504 = vperm.xlu0 %1040, %v494_v2   ;;  %v528_v8 = vld [vmem:[#allocation2] sm:$0xff]  ;;  %v532_v13 = vld [vmem:[%s1329_s12 + $0x8] sm:$0xff]  ;;  %v534_v15 = vld [vmem:[%s1329_s12 + $0x18] sm:$0xff]  ;;  %955 = vmatprep.subr.bf16.mxu1 %v1168_v32  ;;  %s740_s30 = sadd.s32 %s1152_s21, %s738_s24  ;;  %s743_s15 = sand.u32 127, %s1148_s20 }
  0x3d   : > { %v688_v9 = vld [vmem:[%s1461_s9] sm:$0xf]  ;;  %945 = vmatprep.subr.bf16.mxu0 %v528_v8  ;;  %v622_v14 = vld [vmem:[%s1459_s7 + $0x8] sm:$0xff]  ;;  %v624_v16 = vld [vmem:[%s1459_s7 + $0x18] sm:$0xff]  ;;  %959 = vmatprep.mubr.msk.bf16.mxu1 %vm1169_vm1, %v1168_v32  ;;  %s930_s11 = sshll.u32 %s740_s30, 7  ;;  %s932_s10 = sshll.u32 %s1148_s20, 1 }
  0x3e   : > { %946 = vmatpush3.bf16.msra.mxu0 %v528_v8  ;;  %v1042_v11 = vld [vmem:[%s1458_s6] sm:$0xff]   ;;  %v1043_v31 = vld [vmem:[%s1458_s6 + $0x8] sm:$0xff]   ;;  %s744_s16 = sadd.s32 %s930_s11, %s743_s15  ;;  %s1491_s18 = sld [smem:[#allocation10_spill]] }
  0x3f   : > { %947 = vmatprep.subr.bf16.mxu0 %v529_v10  ;;  %951 = vmatprep.mubr.msk.bf16.mxu0 %vm565_vm0, %v1042_v11  ;;  %v531_v12 = vld [vmem:[%s1329_s12] sm:$0xff]  ;;  %s745_s26 = sld [smem:[#allocation4 + %s744_s16]]  ;;  %s772_s19 = sadd.s32 %s1152_s21, %s932_s10 }
  0x40   : > { %509 = vperm.xlu0 %1040, %v495_v4   ;;  %537 = vperm.xlu1 %1041, %v531_v12   ;;  %v924_v17 = vld [vmem:[%s454_s0] ss:$0 sm:$0xff]  ;;  %s933_s12 = sshll.u32 %s772_s19, 6  ;;  %s776_s0 = sshll.u32 %s436_s13, 4  ;;  %s1397_s0 = int_to_ptr.vmem [resolvable:$true] %s776_s0 }
  0x41   : > { %s1493_s22 = sld [smem:[#allocation20_spill]]  ;;  %s1068_s11 = scalar_lea.vmem %s1397_s0, 64 }
  0x42   : > { %948 = vmatpush3.bf16.msra.mxu0 %v529_v10  ;;  %p1069_p6 = scmp.ne.s32.totalorder %s1397_s0, %s1068_s11  ;;  %s1170_s15 = smov [#allocation5]  }
  0x43   : > { %s1072_s16 = sshll.u32 %s1170_s15, 4  ;;  %s1073_s16 = int_to_ptr.vmem [resolvable:$false] %s1072_s16 }
  0x44   : > { %627 = vperm.xlu0 %1040, %v621_v5   ;;  %542 = vperm.xlu1 %1041, %v532_v13   ;;  %s1495_s20 = sand.u32 1, %s1491_s18   ;;  %p1070_p7 = pnand %p1069_p6, %p1280_p8 }
  0x45   : > { %s746_s29 = scvt.s32.f32 %s745_s26  ;;  %s760_s21 = scalar_lea.sflag [#allocation6], %s1495_s20 }
  0x46   : > { %p1071_p9 = pneg %p1070_p7  ;;  %s1074_s26 = scalar_lea.vmem %s1073_s16, 128 }
  0x47   : > { %s1494_s30 = smov %s1493_s22  ;;  %s1395_s24 = scalar_lea.hbm %s1493_s22, %s933_s12 }
  0x48   : > { %547 = vperm.xlu0 %1040, %v533_v6   ;;  %632 = vperm.xlu1 %1041, %v622_v14   ;;  %p1075_p10 = scmp.lt.s32.totalorder %s1397_s0, %s1073_s16  ;;  %p1076_p11 = scmp.lt.s32.totalorder %s1074_s26, %s1068_s11 }
  0x4a   : > { %p1077_p12 = por %p1076_p11, %p1075_p10 }
  0x4c   : > { %637 = vperm.xlu0 %1040, %v623_v7   ;;  %552 = vperm.xlu1 %1041, %v534_v15   ;;  %p1078_p0 = pnand %p1077_p12, %p1071_p9 }
  0x50   : > { %691 = vperm.xlu0 %1040, %v688_v9   ;;  %642 = vperm.xlu1 %1041, %v624_v16  }
  0xbb   : > { %v505_v18 = vpop.permute.xlu0 %504 }
  0xbc   : > { %v512_v19 = vsub.f32 %v924_v17, %v505_v18 }
  0xbe   : > { %v514_v20 = vmul.f32 %v512_v19, %v512_v19 }
  0xbf   : > { %v510_v21 = vpop.permute.xlu0 %509  ;;  %v538_v33 = vpop.permute.xlu1 %537 }
  0xc0   : > { %v516_v22 = vmul.f32 -0.78125, %v514_v20  ;;  %v513_v23 = vsub.f32 %v924_v17, %v510_v21 }
  0xc2   : > { %v515_v24 = vmul.f32 %v513_v23, %v513_v23  ;;  %v518_v25 = vmul.f32 1.442695, %v516_v22 }
  0xc3   : > { %v543_v34 = vpop.permute.xlu1 %542  ;;  %v628_v35 = vpop.permute.xlu0 %627 }
  0xc4   : > { %v517_v26 = vmul.f32 -0.78125, %v515_v24  ;;  %1044 = vpow2.f32 %v518_v25 }
  0xc6   : > { %v520_v27 = vmul.f32 1.442695, %v517_v26 }
  0xc7   : > { %v633_v36 = vpop.permute.xlu1 %632  ;;  %v548_v37 = vpop.permute.xlu0 %547 }
  0xc8   : > { %1046 = vpow2.f32 %v520_v27 }
  0xcb   : > { %v553_v38 = vpop.permute.xlu1 %552  ;;  %v638_v42 = vpop.permute.xlu0 %637 }
  0xce   : > { %v1045_v28 = vpop.eup %1044 }
  0xcf   : > { %v643_v48 = vpop.permute.xlu1 %642 }
  0xd2   : > { %v1047_v29 = vpop.eup %1046 }
  0xd3   : > { %v522_v30 = vpack.c.bf16 %v1047_v29, %v1045_v28  ;;  %v685_v28 = vld [vmem:[%s1460_s8] sm:$0x3] }
  0xd4   : > { %v747_v29 = vld [vmem:[%s460_s14] sm:$0x1] }
  0xd5   : > { %949 = vmatprep.subr.bf16.mxu0 %v522_v30 }
  0xd6   : > { %950 = vmatpush3.bf16.msra.mxu0 %v522_v30  ;;  %v748_v30 = vstv %s746_s29 }
  0xd9   : > { %952 = vmatmul.mubr.msk.bf16.vlgmr.msra.gmra.mrb[0].mxu0 %vm565_vm0, %v1043_v31  ;;  %v752_v31 = vlaneseq }
 0x1ac   : > { %v953_v39 = vpop.f32.mrb[0].mxu0 }
 0x1ad   : > { %v615_v40 = vadd.f32 %v953_v39, %v548_v37  ;;  %v606_v41 = vpop.f32.mrb[1].mxu0  ;;  %v692_v37 = vpop.permute.xlu0 %691 }
 0x1ae   : > { %v607_v43 = vadd.f32 %v606_v41, %v538_v33  ;;  %v954_v44 = vpop.f32.mrb[2].mxu0  ;;  %v753_v33 = vshrl.u32 %v752_v31, 7 }
 0x1af   : > { %v647_v45 = vadd.f32 %v638_v42, %v615_v40  ;;  %v618_v46 = vadd.f32 %v954_v44, %v553_v38  ;;  %v609_v47 = vpop.f32.mrb[3].mxu0 }
 0x1b0   : > { %v645_v49 = vadd.f32 %v628_v35, %v607_v43  ;;  %v610_v50 = vadd.f32 %v609_v47, %v543_v34  ;;  %v754_v34 = vsub.s32 0, %v753_v33 }
 0x1b1   : > { %v651_v51 = vmul.f32 %v647_v45, %v647_v45  ;;  %v648_v52 = vadd.f32 %v643_v48, %v618_v46 }
 0x1b2   : > { %v649_v53 = vmul.f32 %v645_v49, %v645_v49  ;;  %v646_v54 = vadd.f32 %v633_v36, %v610_v50 }
 0x1b3   : > { %v655_v55 = vmul.f32 %v651_v51, %v647_v45  ;;  %v652_v56 = vmul.f32 %v648_v52, %v648_v52 }
 0x1b4   : > { %v653_v57 = vmul.f32 %v649_v53, %v645_v49  ;;  %v650_v58 = vmul.f32 %v646_v54, %v646_v54 }
 0x1b5   : > { %v659_v59 = vmul.f32 0.044715, %v655_v55  ;;  %v656_v60 = vmul.f32 %v652_v56, %v648_v52 }
 0x1b6   : > { %v657_v61 = vmul.f32 0.044715, %v653_v57  ;;  %v654_v62 = vmul.f32 %v650_v58, %v646_v54 }
 0x1b7   : > { %v663_v63 = vadd.f32 %v659_v59, %v647_v45  ;;  %v660_v0 = vmul.f32 0.044715, %v656_v60 }
 0x1b8   : > { %v658_v1 = vmul.f32 0.044715, %v654_v62  ;;  %v661_v2 = vadd.f32 %v657_v61, %v645_v49 }
 0x1b9   : > { %v667_v4 = vmul.f32 0.7978846, %v663_v63  ;;  %v664_v5 = vadd.f32 %v660_v0, %v648_v52 }
 0x1ba   : > { %v662_v6 = vadd.f32 %v658_v1, %v646_v54  ;;  %v665_v7 = vmul.f32 0.7978846, %v661_v2 }
 0x1bb   : > { %v668_v8 = vmul.f32 0.7978846, %v664_v5  ;;  %1048 = vtanh.f32 %v667_v4 }
 0x1bc   : > { %v666_v9 = vmul.f32 0.7978846, %v662_v6  ;;  %1050 = vtanh.f32 %v665_v7 }
 0x1bd   : > { %1052 = vtanh.f32 %v668_v8 }
 0x1be   : > { %1054 = vtanh.f32 %v666_v9 }
 0x1c5   : > { %v1049_v10 = vpop.eup %1048 }
 0x1c6   : > { %v1051_v11 = vpop.eup %1050  ;;  %v675_v12 = vadd.f32 1.0, %v1049_v10 }
 0x1c7   : > { %v1053_v13 = vpop.eup %1052  ;;  %v673_v14 = vadd.f32 1.0, %v1051_v11 }
 0x1c8   : > { %v1055_v15 = vpop.eup %1054  ;;  %v676_v16 = vadd.f32 1.0, %v1053_v13  ;;  %v679_v17 = vmul.f32 0.5, %v675_v12 }
 0x1c9   : > { %v674_v18 = vadd.f32 1.0, %v1055_v15  ;;  %v677_v19 = vmul.f32 0.5, %v673_v14 }
 0x1ca   : > { %v680_v20 = vmul.f32 0.5, %v676_v16  ;;  %v683_v22 = vmul.f32 %v679_v17, %v647_v45 }
 0x1cb   : > { %v678_v21 = vmul.f32 0.5, %v674_v18  ;;  %v681_v24 = vmul.f32 %v677_v19, %v645_v49 }
 0x1cc   : > { %v684_v23 = vmul.f32 %v680_v20, %v648_v52 }
 0x1cd   : > { %v682_v25 = vmul.f32 %v678_v21, %v646_v54 }
 0x1ce   : > { %v687_v26 = vpack.c.bf16 %v684_v23, %v683_v22 }
 0x1cf   : > { %v686_v27 = vpack.c.bf16 %v682_v25, %v681_v24 }
 0x1d1   : > { %956 = vmatpush3.bf16.msra.mxu1 %v686_v27 }
 0x1d2   : > { %957 = vmatprep.subr.bf16.mxu1 %v1168_v32  ;;  %v749_v32 = vmul.f32 %v748_v30, %v747_v29 }
 0x1d4   : > { %vm750_vm3 = vcmp.gt.f32.partialorder %v749_v32, 0.0 }
 0x1d5   : > { %958 = vmatpush3.bf16.msra.mxu1 %v687_v26  ;;  %v751_v35 = vsel %vm750_vm3, 1, %v1167_v3 }
 0x1d6   : > { %v755_v36 = vrot.slane %v751_v35, %v754_v34 }
 0x1d8   : > { %960 = vmatmul.mubr.msk.bf16.vlgmr.msra.gmra.mrb[0].mxu1 %vm694_vm2, %v685_v28  ;;  %vm756_vm4 = vcmp.eq.s32.totalorder %v755_v36, 1 }
 0x2ab   : > { %v732_v38 = vpop.f32.mrb[0].mxu1 }
 0x2ac   : > { %v733_v39 = vadd.f32 %v732_v38, %v692_v37  ;;  %v961_v40 = vpop.f32.mrb[1].mxu1 }
 0x2ad   : > { %v735_v41 = vpop.f32.mrb[2].mxu1 }
 0x2ae   : > { %v757_v3 = vsel %vm756_vm4, %v733_v39, -inf  ;;  %v962_v42 = vpop.f32.mrb[3].mxu1 }
 0x2af   : > { %758 = vst [vmem:[%s436_s13] sm:$0xf] %v757_v3 }
 0x2b0   : > { %1081 = shalt.err (!%p1078_p0)
}
 0x2b1   : > { %s1082_s17 = scalar_lea.hbm %s1395_s24, 64  ;;  %s1086_s27 = scalar_lea.hbm %s1494_s30, 2048 }
 0x2b2   : > { %p1083_p1 = scmp.ne.s32.totalorder %s1395_s24, %s1082_s17  ;;  %p1087_p4 = scmp.lt.u32.totalorder %s1395_s24, %s1494_s30 }
 0x2b3   : > { %p1088_p5 = scmp.lt.u32.totalorder %s1086_s27, %s1082_s17  ;;  %p1090_p7 = scmp.lt.u32.totalorder %s1082_s17, %s1395_s24 }
 0x2b4   : > { %p1084_p2 = pnand %p1083_p1, %p1280_p8 }
 0x2b5   : > { %p1089_p6 = por %p1088_p5, %p1087_p4 }
 0x2b6   : > { %p1085_p3 = pneg %p1084_p2 }
 0x2b7   : > { %p1091_p9 = por %p1090_p7, %p1089_p6 }
 0x2b9   : > { %p1092_p10 = pnand %p1091_p9, %p1085_p3 }
 0x2bb   : > { %1095 = shalt.err (!%p1092_p10)
}
 0x2bc   : > { %963 = dma.vmem_to_hbm [thread:$0]  (%p1280_p8), %s1397_s0, 64, %s1395_s24, %s760_s21  }
 0x2bd PF: > { %s1496_s18 = sld [smem:[#allocation14_spill]]  ;;  %s1497_s19 = sld [smem:[#allocation9_spill]] }
 0x2c3   : > { %p969_p11 = scmp.ge.s32.totalorder %s1496_s18, 2  ;;  %s788_s25 = sand.u32 1, %s1497_s19  }
 0x2c4   : > { %s789_s14 = scalar_lea.sflag [#allocation6], %s788_s25 }
 0x2c5   : > { %p966_p12 = pnand %p969_p11, %p1289_p13 }
 0x2c7   : > { %1131 = dma.done.wait (!%p966_p12), %s789_s14, 64  }
 0x2c8   : > { %1133 = vsyncadd (!%p966_p12), %s789_s14, 4294967232  ;;  %s29_s24 = sadd.s32 1, %s1496_s18   ;;  %s1499_s18 = sld [smem:[#allocation10_spill]] }
 0x2c9   : > { %p26_p0 = scmp.ge.s32.totalorder %s29_s24, 34   ;;  %s1500_s19 = sld [smem:[#allocation11_spill]] }
 0x2ca   : > { %s1501_s0 = sld [smem:[#allocation19_spill]]  ;;  %s1502_s20 = sld [smem:[#allocation12_spill]] }
 0x2cb   : > { %s1503_s21 = sld [smem:[#allocation13_spill]]  ;;  %s1504_s22 = sld [smem:[#allocation15_spill]] }
 0x2cc   : > { %s1505_s23 = sld [smem:[#allocation17_spill]]  ;;  %28 = sbr.rel (!%p26_p0) target bundleno = 20 (0x14), region = 104 }
 0x2d3   :  { %794 = vsyncpa [#allocation6], 1 }
 0x2d4   :  { %796 = vsyncpa [#allocation6 + $0x1], 1 }

</bundles_post_ra>
